<compile_context>
chip_gen: v7x
topology: tpu7x:2x2x1
jax: 0.10.0
libtpu: 0.0.40
codegen_flags: <defaults>
</compile_context>

<pallas_src>
import functools

import jax
import jax.numpy as jnp
from jax.experimental import pallas as pl
from jax.experimental.pallas import tpu as pltpu


def _round_up(x, m):
    return ((x + m - 1) // m) * m


def _pick_tile(n_pad, target):
    # Largest power-of-two tile <= target that divides n_pad (n_pad is a
    # multiple of 128, so this always terminates at >= 128).
    t = min(target, n_pad)
    while n_pad % t:
        t //= 2
    return t


def _bf16_eup_available():
    # bf16 VPU/EUP path exists on v6e/v7x; v5e (and older) must stay f32.
    try:
        kind = jax.devices()[0].device_kind.lower()
    except Exception:
        return False
    return any(tag in kind for tag in ("v6", "v7"))


def _inner_product_decoder_kernel(z_row_ref, z_col_ref, out_ref, *,
                                  sigmoid, tanh_in_bf16, col_resident, tn):
    # z_row_ref: (tm, D).  z_col_ref: (n_pad, D) if resident else (tn, D).
    z_row = z_row_ref[...]
    if col_resident:
        # Slice this grid step's (tn, D) column stripe out of the resident
        # copy of z; start is a multiple of 128 (tn is), so the load is
        # layout-aligned.
        start = pl.multiple_of(pl.program_id(1) * tn, 128)
        z_col = z_col_ref[pl.ds(start, tn), :]
    else:
        z_col = z_col_ref[...]

    # Contract on the last dim of BOTH operands -> z_row @ z_col.T without an
    # explicit in-kernel transpose; native-dtype operands, f32 accumulation.
    logits = jax.lax.dot_general(
        z_row, z_col,
        dimension_numbers=(((1,), (1,)), ((), ())),
        preferred_element_type=jnp.float32,
    )
    if sigmoid:
        if tanh_in_bf16:
            # bf16 EUP path (v6e/v7x only): packed vregs, ~2x transcendental
            # throughput.  Only used when the caller asked for bf16 output.
            logits = logits.astype(jnp.bfloat16)
        # Single-EUP-op sigmoid.
        logits = 0.5 * (jnp.tanh(0.5 * logits) + 1.0)
    out_ref[...] = logits.astype(out_ref.dtype)


def inner_product_decoder_adj(z, sigmoid=True, *, tm=None, tn=None, out_dtype=None):
    """Pallas equivalent of InnerProductDecoderAdj.forward(z, sigmoid).

    For best throughput on realistic graph sizes pass out_dtype=jnp.bfloat16
    when sigmoid=True: the kernel is HBM output-writeback bound (D << N), so
    halving the output bytes is ~2x end-to-end on v5e/v6e.
    """
    N, D = z.shape
    out_dtype = jnp.dtype(z.dtype if out_dtype is None else out_dtype)
    in_b = jnp.dtype(z.dtype).itemsize
    out_b = out_dtype.itemsize

    # Only the tiny input is padded (to a multiple of 128 rows); the output is
    # exactly (N, N) and ragged edge blocks are masked by Pallas.
    n_pad = _round_up(N, 128)
    if tm is None:
        tm = _pick_tile(n_pad, 512)   # capped at 512 for v7x's 64 MiB VMEM
    if tn is None:
        tn = _pick_tile(n_pad, 512)   # keep >= 128-wide lane-dense stores
    assert tm % 8 == 0 and tn % 128 == 0, "tiles must be (8,128)-aligned"
    assert n_pad % tm == 0 and n_pad % tn == 0, \
        "tm/tn must divide round_up(N, 128) (avoids over-padding / OOB slices)"

    z_pad = z if n_pad == N else jnp.pad(z, ((0, n_pad - N), (0, 0)))

    # Hold z resident in VMEM for the column operand when it is small (the
    # common GAE case): input HBM traffic drops to a single read of z.
    col_resident = (n_pad * D * in_b) <= (4 << 20)

    # bf16 tanh only when the caller wants bf16 probabilities AND the chip has
    # a bf16 EUP path (v6e/v7x); v5e stays strictly f32.
    tanh_in_bf16 = bool(sigmoid and out_dtype == jnp.bfloat16 and _bf16_eup_available())

    grid = (n_pad // tm, n_pad // tn)  # j (columns) is innermost / fastest.

    # VMEM budget: double-buffered row/col/output blocks + f32 logits tile.
    vmem_need = (
        2 * tm * D * in_b
        + (2 * n_pad * D * in_b if col_resident else 2 * tn * D * in_b)
        + 2 * tm * tn * out_b
        + tm * tn * 4
    )
    vmem_limit = int(min(max(vmem_need + vmem_need // 2, 16 << 20), 32 << 20))

    col_spec = (
        pl.BlockSpec((n_pad, D), lambda i, j: (0, 0))      # resident, DMA'd once
        if col_resident else
        pl.BlockSpec((tn, D), lambda i, j: (j, 0))          # streamed per column
    )

    cost = pl.CostEstimate(
        flops=2 * n_pad * n_pad * D,
        transcendentals=(n_pad * n_pad) if sigmoid else 0,
        bytes_accessed=(
            n_pad * D * in_b * (2 if col_resident else (1 + grid[0]))
            + N * N * out_b
        ),
    )

    kernel = functools.partial(
        _inner_product_decoder_kernel,
        sigmoid=sigmoid,
        tanh_in_bf16=tanh_in_bf16,
        col_resident=col_resident,
        tn=tn,
    )

    return pl.pallas_call(
        kernel,
        out_shape=jax.ShapeDtypeStruct((N, N), out_dtype),
        grid_spec=pltpu.PrefetchScalarGridSpec(
            num_scalar_prefetch=0,
            grid=grid,
            in_specs=[
                # Row block: index constant across j -> DMA'd once per row stripe.
                pl.BlockSpec((tm, D), lambda i, j: (i, 0)),
                col_spec,
            ],
            out_specs=pl.BlockSpec((tm, tn), lambda i, j: (i, j)),
        ),
        compiler_params=pltpu.CompilerParams(
            # Megacore split pinned to the row axis i; sequential j sweep per
            # core preserves the resident/row-block reuse.
            dimension_semantics=("parallel", "arbitrary"),
            vmem_limit_bytes=vmem_limit,
        ),
        cost_estimate=cost,
    )(z_pad, z_pad)


if __name__ == "__main__":
    # Small deterministic example: N=8 nodes, latent dim D=32.
    key = jax.random.PRNGKey(0)
    z = jax.random.normal(key, (8, 32), dtype=jnp.float32)

    out = jax.block_until_ready(inner_product_decoder_adj(z, sigmoid=True))
    ref = jax.nn.sigmoid(z @ z.T)
    assert out.shape == (8, 8)
    assert out.dtype == z.dtype
    assert jnp.allclose(out, ref, atol=1e-5, rtol=1e-5)

    # sigmoid=False path.
    logits = jax.block_until_ready(inner_product_decoder_adj(z, sigmoid=False))
    assert jnp.allclose(logits, z @ z.T, atol=1e-5, rtol=1e-5)

    # Multi-tile grid + ragged-N path (N=300 not a multiple of 128): output is
    # exactly (300, 300) with masked edge stores -- no padded output, no slice.
    z2 = jax.random.normal(jax.random.PRNGKey(1), (300, 48), dtype=jnp.float32)
    out2 = jax.block_until_ready(inner_product_decoder_adj(z2, tm=128, tn=128))
    ref2 = jax.nn.sigmoid(z2 @ z2.T)
    assert out2.shape == (300, 300)
    assert jnp.allclose(out2, ref2, atol=1e-5, rtol=1e-5)

    # Recommended perf path: f32 latents, bf16 probabilities (halves the
    # dominant output writeback; bf16 tanh on v6e/v7x).
    out2_bf16 = jax.block_until_ready(
        inner_product_decoder_adj(z2, out_dtype=jnp.bfloat16))
    assert out2_bf16.dtype == jnp.bfloat16
    assert jnp.allclose(out2_bf16.astype(jnp.float32), ref2, atol=3e-2, rtol=3e-2)

    # Native-bf16 operand path (fed straight to the MXU, f32 accumulation).
    z3 = z.astype(jnp.bfloat16)
    out3 = jax.block_until_ready(inner_product_decoder_adj(z3))
    ref3 = jax.nn.sigmoid(z3.astype(jnp.float32) @ z3.astype(jnp.float32).T)
    assert jnp.allclose(out3.astype(jnp.float32), ref3, atol=3e-2, rtol=3e-2)

    print("KERNEL_OK")
</pallas_src>

<mosaic_0001>
module attributes {stable_mosaic.version = 11 : i64} {
  func.func @_inner_product_decoder_kernel(%arg0: i32, %arg1: i32, %arg2: memref<128x32xf32, #tpu.memory_space<vmem>>, %arg3: memref<128x32xf32, #tpu.memory_space<vmem>>, %arg4: memref<128x128xf32, #tpu.memory_space<vmem>>) attributes {dimension_semantics = [#tpu.dimension_semantics<parallel>, #tpu.dimension_semantics<arbitrary>], iteration_bounds = array<i64: 1, 1>, scalar_prefetch = 0 : i64, scratch_operands = 0 : i64, tpu.core_type = #tpu.core_type<tc>, window_params = [{transform_indices = @transform_0, window_bounds = array<i64: 128, 32>}, {pipeline_mode = #tpu.pipeline_mode<synchronous>, transform_indices = @transform_1, window_bounds = array<i64: 128, 32>}, {transform_indices = @transform_2, window_bounds = array<i64: 128, 128>}]} {
    %c0 = arith.constant 0 : index
    %c0_0 = arith.constant 0 : index
    %0 = vector.load %arg2[%c0, %c0_0] : memref<128x32xf32, #tpu.memory_space<vmem>>, vector<128x32xf32>
    %c128_i32 = arith.constant 128 : i32
    %1 = arith.muli %arg1, %c128_i32 : i32
    %2 = tpu.assume_multiple %1, 128 : i32
    %3 = arith.index_cast %2 : i32 to index
    %c0_1 = arith.constant 0 : index
    %4 = vector.load %arg3[%3, %c0_1] : memref<128x32xf32, #tpu.memory_space<vmem>>, vector<128x32xf32>
    %cst = arith.constant dense<0.000000e+00> : vector<128x128xf32>
    %5 = tpu.matmul %0, %4, %cst {dimension_numbers = #tpu.dot_dimension_numbers<[1], [1], [0], [0], [0, 0, 1, 0], [], []>} : vector<128x32xf32>, vector<128x32xf32>, vector<128x128xf32> -> vector<128x128xf32>
    %cst_2 = arith.constant 5.000000e-01 : f32
    %6 = vector.broadcast %cst_2 : f32 to vector<128x128xf32>
    %7 = arith.mulf %6, %5 : vector<128x128xf32>
    %8 = math.tanh %7 : vector<128x128xf32>
    %cst_3 = arith.constant 1.000000e+00 : f32
    %9 = vector.broadcast %cst_3 : f32 to vector<128x128xf32>
    %10 = arith.addf %8, %9 : vector<128x128xf32>
    %cst_4 = arith.constant 5.000000e-01 : f32
    %11 = vector.broadcast %cst_4 : f32 to vector<128x128xf32>
    %12 = arith.mulf %11, %10 : vector<128x128xf32>
    %c0_5 = arith.constant 0 : index
    %c0_6 = arith.constant 0 : index
    %13 = vector.load %arg4[%c0_5, %c0_6] : memref<128x128xf32, #tpu.memory_space<vmem>>, vector<128x128xf32>
    tpu.vector_store %arg4[%c0_5, %c0_6], %12 {strides = array<i32>} : memref<128x128xf32, #tpu.memory_space<vmem>>, vector<128x128xf32>,
    return
  }
  func.func @transform_0(%arg0: i32, %arg1: i32) -> (i32, i32) {
    %c0_i32 = arith.constant 0 : i32
    %c0_i32_0 = arith.constant 0 : i32
    return %arg0, %c0_i32 : i32, i32
  }
  func.func @transform_1(%arg0: i32, %arg1: i32) -> (i32, i32) {
    %c0_i32 = arith.constant 0 : i32
    %c0_i32_0 = arith.constant 0 : i32
    %c0_i32_1 = arith.constant 0 : i32
    return %c0_i32, %c0_i32_0 : i32, i32
  }
  func.func @transform_2(%arg0: i32, %arg1: i32) -> (i32, i32) {
    %c0_i32 = arith.constant 0 : i32
    return %arg0, %arg1 : i32, i32
  }
}

</mosaic_0001>

<bundles_post_ra>
// kernel: tpu_custom_call.1
= control target key start
LH: loop header
LB: loop body
LE: loop exit
PB: predicated region body
PF: predicated region fallthrough
CT: control target
= control target key end

     0   :  { %7 = vsyncpa [#allocation3], 0  ;;  %vm46_vm0 = vcmask 261120   ;;  %s839_s0 = inlined_call_operand.vmem [shape: f32[128,32], index: 0, kind: input, shape index: {}]   ;;  %s840_s1 = inlined_call_operand.vmem [shape: f32[128,32], index: 1, kind: input, shape index: {}]   ;;  %s841_s2 = inlined_call_operand.hbm [shape: f32[8,8], index: 2, kind: output, shape index: {}]  }
   0x1   :  { %v30_v0 = vld [vmem:[%s840_s1] sm:$0xff]  ;;  %v31_v1 = vld [vmem:[%s840_s1 + $0x8] sm:$0xff]  ;;  %vm653_vm1 = vmpackc.low %vm46_vm0, %vm46_vm0 }
   0x2   :  { %v504_v2 = vpack.c.bf16 %v31_v1, %v30_v0  ;;  %v32_v4 = vld [vmem:[%s840_s1 + $0x10] sm:$0xff]  ;;  %v33_v5 = vld [vmem:[%s840_s1 + $0x18] sm:$0xff]  ;;  %v34_v7 = vld [vmem:[%s840_s1 + $0x20] sm:$0xff] }
   0x3   :  { %v510_v6 = vpack.c.bf16 %v33_v5, %v32_v4  ;;  %v35_v8 = vld [vmem:[%s840_s1 + $0x28] sm:$0xff]  ;;  %v12_v9 = vld [vmem:[%s839_s0] sm:$0xff]  ;;  %v36_v12 = vld [vmem:[%s840_s1 + $0x30] sm:$0xff] }
   0x4   :  { %506 = vmatprep.subr.msk.bf16.mxu0 %vm653_vm1, %v504_v2  ;;  %552 = vmatprep.subr.msk.bf16.mxu1 %vm653_vm1, %v504_v2  ;;  %v20_v10 = vld [vmem:[%s839_s0 + $0x40] sm:$0xff]  ;;  %v516_v11 = vpack.c.bf16 %v35_v8, %v34_v7  ;;  %v37_v13 = vld [vmem:[%s840_s1 + $0x38] sm:$0xff]  ;;  %v39_v16 = vld [vmem:[%s840_s1 + $0x48] sm:$0xff] }
   0x5   :  { %509 = vmatpush3.bf16.xpose.msk.msra.mxu0 %vm653_vm1, %v504_v2  ;;  %560 = vmatpush3.bf16.xpose.msk.msra.mxu1 %vm653_vm1, %v504_v2  ;;  %v522_v14 = vpack.c.bf16 %v37_v13, %v36_v12  ;;  %v38_v15 = vld [vmem:[%s840_s1 + $0x40] sm:$0xff]  ;;  %v40_v18 = vld [vmem:[%s840_s1 + $0x50] sm:$0xff]  ;;  %v41_v19 = vld [vmem:[%s840_s1 + $0x58] sm:$0xff] }
   0x6   :  { %512 = vmatprep.subr.msk.bf16.mxu0 %vm653_vm1, %v510_v6  ;;  %553 = vmatprep.subr.msk.bf16.mxu1 %vm653_vm1, %v510_v6  ;;  %v528_v17 = vpack.c.bf16 %v39_v16, %v38_v15  ;;  %v534_v20 = vpack.c.bf16 %v41_v19, %v40_v18  ;;  %v42_v21 = vld [vmem:[%s840_s1 + $0x60] sm:$0xff]  ;;  %v43_v22 = vld [vmem:[%s840_s1 + $0x68] sm:$0xff]  ;;  %v44_v24 = vld [vmem:[%s840_s1 + $0x70] sm:$0xff] }
   0x7   :  { %480 = vmatprep.mubr.msk.f32.mxu0 %vm46_vm0, %v12_v9  ;;  %492 = vmatprep.mubr.msk.f32.mxu1 %vm46_vm0, %v20_v10  ;;  %v540_v23 = vpack.c.bf16 %v43_v22, %v42_v21  ;;  %v45_v25 = vld [vmem:[%s840_s1 + $0x78] sm:$0xff]  ;;  %v13_v27 = vld [vmem:[%s839_s0 + $0x8] sm:$0xff]  ;;  %v14_v29 = vld [vmem:[%s839_s0 + $0x10] sm:$0xff] }
   0x8   :  { %v546_v26 = vpack.c.bf16 %v45_v25, %v44_v24  ;;  %v21_v28 = vld [vmem:[%s839_s0 + $0x48] sm:$0xff]  ;;  %v22_v30 = vld [vmem:[%s839_s0 + $0x50] sm:$0xff]  ;;  %v15_v31 = vld [vmem:[%s839_s0 + $0x18] sm:$0xff] }
   0x9   :  { %v23_v32 = vld [vmem:[%s839_s0 + $0x58] sm:$0xff]  ;;  %v16_v33 = vld [vmem:[%s839_s0 + $0x20] sm:$0xff]  ;;  %v17_v35 = vld [vmem:[%s839_s0 + $0x28] sm:$0xff] }
   0xa   :  { %v24_v34 = vld [vmem:[%s839_s0 + $0x60] sm:$0xff]  ;;  %v25_v36 = vld [vmem:[%s839_s0 + $0x68] sm:$0xff]  ;;  %v18_v37 = vld [vmem:[%s839_s0 + $0x30] sm:$0xff] }
   0xb   :  { %v26_v38 = vld [vmem:[%s839_s0 + $0x70] sm:$0xff]  ;;  %v19_v39 = vld [vmem:[%s839_s0 + $0x38] sm:$0xff] }
   0xc   :  { %v27_v40 = vld [vmem:[%s839_s0 + $0x78] sm:$0xff] }
   0xd   :  { %515 = vmatpush3.bf16.xpose.msk.msra.mxu0 %vm653_vm1, %v510_v6  ;;  %561 = vmatpush3.bf16.xpose.msk.msra.mxu1 %vm653_vm1, %v510_v6 }
   0xe   :  { %518 = vmatprep.subr.msk.bf16.mxu0 %vm653_vm1, %v516_v11  ;;  %554 = vmatprep.subr.msk.bf16.mxu1 %vm653_vm1, %v516_v11 }
  0x15   :  { %521 = vmatpush3.bf16.xpose.msk.msra.mxu0 %vm653_vm1, %v516_v11  ;;  %562 = vmatpush3.bf16.xpose.msk.msra.mxu1 %vm653_vm1, %v516_v11 }
  0x16   :  { %524 = vmatprep.subr.msk.bf16.mxu0 %vm653_vm1, %v522_v14  ;;  %555 = vmatprep.subr.msk.bf16.mxu1 %vm653_vm1, %v522_v14 }
  0x1d   :  { %527 = vmatpush3.bf16.xpose.msk.msra.mxu0 %vm653_vm1, %v522_v14  ;;  %563 = vmatpush3.bf16.xpose.msk.msra.mxu1 %vm653_vm1, %v522_v14 }
  0x1e   :  { %530 = vmatprep.subr.msk.bf16.mxu0 %vm653_vm1, %v528_v17  ;;  %556 = vmatprep.subr.msk.bf16.mxu1 %vm653_vm1, %v528_v17 }
  0x25   :  { %533 = vmatpush3.bf16.xpose.msk.msra.mxu0 %vm653_vm1, %v528_v17  ;;  %564 = vmatpush3.bf16.xpose.msk.msra.mxu1 %vm653_vm1, %v528_v17 }
  0x26   :  { %536 = vmatprep.subr.msk.bf16.mxu0 %vm653_vm1, %v534_v20  ;;  %557 = vmatprep.subr.msk.bf16.mxu1 %vm653_vm1, %v534_v20 }
  0x2d   :  { %539 = vmatpush3.bf16.xpose.msk.msra.mxu0 %vm653_vm1, %v534_v20  ;;  %565 = vmatpush3.bf16.xpose.msk.msra.mxu1 %vm653_vm1, %v534_v20 }
  0x2e   :  { %542 = vmatprep.subr.msk.bf16.mxu0 %vm653_vm1, %v540_v23  ;;  %558 = vmatprep.subr.msk.bf16.mxu1 %vm653_vm1, %v540_v23 }
  0x35   :  { %545 = vmatpush3.bf16.xpose.msk.msra.mxu0 %vm653_vm1, %v540_v23  ;;  %566 = vmatpush3.bf16.xpose.msk.msra.mxu1 %vm653_vm1, %v540_v23 }
  0x36   :  { %548 = vmatprep.subr.msk.bf16.mxu0 %vm653_vm1, %v546_v26  ;;  %559 = vmatprep.subr.msk.bf16.mxu1 %vm653_vm1, %v546_v26 }
  0x3d   :  { %551 = vmatpush3.bf16.xpose.msk.msra.mxu0 %vm653_vm1, %v546_v26  ;;  %567 = vmatpush3.bf16.xpose.msk.msra.mxu1 %vm653_vm1, %v546_v26 }
  0x44   :  { %481 = vmatmul.mubr.msk.f32.vlgmr.msra.gmra.mrb[0].mxu0 %vm46_vm0, %v13_v27  ;;  %493 = vmatmul.mubr.msk.f32.vlgmr.msra.gmra.mrb[0].mxu1 %vm46_vm0, %v21_v28 }
  0x45   :  { %483 = vmatprep.mubr.msk.f32.mxu0 %vm46_vm0, %v14_v29  ;;  %495 = vmatprep.mubr.msk.f32.mxu1 %vm46_vm0, %v22_v30 }
  0x48   :  { %484 = vmatmul.mubr.msk.f32.gmra.mrb[2].mxu0 %vm46_vm0, %v15_v31  ;;  %496 = vmatmul.mubr.msk.f32.gmra.mrb[2].mxu1 %vm46_vm0, %v23_v32 }
  0x49   :  { %486 = vmatprep.mubr.msk.f32.mxu0 %vm46_vm0, %v16_v33  ;;  %498 = vmatprep.mubr.msk.f32.mxu1 %vm46_vm0, %v24_v34 }
  0x4c   :  { %487 = vmatmul.mubr.msk.f32.gmra.mrb[4].mxu0 %vm46_vm0, %v17_v35  ;;  %499 = vmatmul.mubr.msk.f32.gmra.mrb[4].mxu1 %vm46_vm0, %v25_v36 }
  0x4d   :  { %489 = vmatprep.mubr.msk.f32.mxu0 %vm46_vm0, %v18_v37  ;;  %501 = vmatprep.mubr.msk.f32.mxu1 %vm46_vm0, %v26_v38 }
  0x50   :  { %490 = vmatmul.mubr.msk.f32.gmra.mrb[6].mxu0 %vm46_vm0, %v19_v39  ;;  %502 = vmatmul.mubr.msk.f32.gmra.mrb[6].mxu1 %vm46_vm0, %v27_v40 }
 0x117   :  { %v482_v41 = vpop.f32.mrb[0].mxu0  ;;  %v494_v42 = vpop.f32.mrb[0].mxu1 }
 0x118   :  { %v289_v43 = vmul.f32 0.5, %v482_v41  ;;  %v297_v44 = vmul.f32 0.5, %v494_v42  ;;  %v209_v45 = vpop.f32.mrb[1].mxu0  ;;  %v249_v46 = vpop.f32.mrb[1].mxu1 }
 0x119   :  { %v288_v47 = vmul.f32 0.5, %v209_v45  ;;  %v296_v48 = vmul.f32 0.5, %v249_v46 }
 0x11a   :  { %571 = vtanh.f32 %v289_v43 }
 0x11b   :  { %573 = vtanh.f32 %v297_v44  ;;  %v485_v49 = vpop.f32.mrb[2].mxu0  ;;  %v497_v50 = vpop.f32.mrb[2].mxu1 }
 0x11c   :  { %575 = vtanh.f32 %v288_v47  ;;  %v291_v51 = vmul.f32 0.5, %v485_v49  ;;  %v299_v52 = vmul.f32 0.5, %v497_v50  ;;  %v219_v53 = vpop.f32.mrb[3].mxu0  ;;  %v259_v54 = vpop.f32.mrb[3].mxu1 }
 0x11d   :  { %577 = vtanh.f32 %v296_v48  ;;  %v290_v55 = vmul.f32 0.5, %v219_v53  ;;  %v298_v56 = vmul.f32 0.5, %v259_v54 }
 0x11e   :  { %579 = vtanh.f32 %v291_v51 }
 0x11f   :  { %581 = vtanh.f32 %v299_v52  ;;  %v488_v57 = vpop.f32.mrb[4].mxu0  ;;  %v500_v58 = vpop.f32.mrb[4].mxu1 }
 0x120   :  { %583 = vtanh.f32 %v290_v55  ;;  %v293_v59 = vmul.f32 0.5, %v488_v57  ;;  %v301_v60 = vmul.f32 0.5, %v500_v58  ;;  %v229_v61 = vpop.f32.mrb[5].mxu0  ;;  %v269_v62 = vpop.f32.mrb[5].mxu1 }
 0x121   :  { %585 = vtanh.f32 %v298_v56  ;;  %v292_v63 = vmul.f32 0.5, %v229_v61  ;;  %v300_v0 = vmul.f32 0.5, %v269_v62 }
 0x122   :  { %587 = vtanh.f32 %v293_v59 }
 0x123   :  { %589 = vtanh.f32 %v301_v60  ;;  %v491_v1 = vpop.f32.mrb[6].mxu0  ;;  %v503_v2 = vpop.f32.mrb[6].mxu1 }
 0x124   :  { %v572_v3 = vpop.eup %571  ;;  %591 = vtanh.f32 %v292_v63  ;;  %v295_v4 = vmul.f32 0.5, %v491_v1  ;;  %v303_v5 = vmul.f32 0.5, %v503_v2  ;;  %v239_v6 = vpop.f32.mrb[7].mxu0 }
 0x125   :  { %v279_v7 = vpop.f32.mrb[7].mxu1  ;;  %v574_v8 = vpop.eup %573  ;;  %v321_v9 = vadd.f32 1.0, %v572_v3  ;;  %593 = vtanh.f32 %v300_v0  ;;  %v294_v10 = vmul.f32 0.5, %v239_v6 }
 0x126   :  { %v302_v11 = vmul.f32 0.5, %v279_v7  ;;  %v576_v12 = vpop.eup %575  ;;  %v329_v13 = vadd.f32 1.0, %v574_v8  ;;  %595 = vtanh.f32 %v295_v4 }
 0x127   :  { %v578_v14 = vpop.eup %577  ;;  %v337_v15 = vmul.f32 0.5, %v321_v9  ;;  %v320_v16 = vadd.f32 1.0, %v576_v12  ;;  %597 = vtanh.f32 %v303_v5 }
 0x128   :  { %v580_v17 = vpop.eup %579  ;;  %v345_v18 = vmul.f32 0.5, %v329_v13  ;;  %v328_v19 = vadd.f32 1.0, %v578_v14  ;;  %599 = vtanh.f32 %v294_v10 }
 0x129   :  { %v582_v20 = vpop.eup %581  ;;  %353 = vst [vmem:[#allocation2 + $0x8] sm:$0xff] %v337_v15  ;;  %v336_v21 = vmul.f32 0.5, %v320_v16  ;;  %v323_v22 = vadd.f32 1.0, %v580_v17  ;;  %601 = vtanh.f32 %v302_v11 }
 0x12a   :  { %v584_v23 = vpop.eup %583  ;;  %361 = vst [vmem:[#allocation2 + $0x48] sm:$0xff] %v345_v18  ;;  %v344_v24 = vmul.f32 0.5, %v328_v19  ;;  %v331_v25 = vadd.f32 1.0, %v582_v20 }
 0x12b   :  { %v586_v26 = vpop.eup %585  ;;  %352 = vst [vmem:[#allocation2] sm:$0xff] %v336_v21  ;;  %v339_v27 = vmul.f32 0.5, %v323_v22  ;;  %v322_v28 = vadd.f32 1.0, %v584_v23 }
 0x12c   :  { %v588_v29 = vpop.eup %587  ;;  %360 = vst [vmem:[#allocation2 + $0x40] sm:$0xff] %v344_v24  ;;  %v347_v30 = vmul.f32 0.5, %v331_v25  ;;  %v330_v31 = vadd.f32 1.0, %v586_v26 }
 0x12d   :  { %v590_v32 = vpop.eup %589  ;;  %355 = vst [vmem:[#allocation2 + $0x18] sm:$0xff] %v339_v27  ;;  %v338_v33 = vmul.f32 0.5, %v322_v28  ;;  %v325_v34 = vadd.f32 1.0, %v588_v29 }
 0x12e   :  { %v592_v35 = vpop.eup %591  ;;  %363 = vst [vmem:[#allocation2 + $0x58] sm:$0xff] %v347_v30  ;;  %v346_v36 = vmul.f32 0.5, %v330_v31  ;;  %v333_v37 = vadd.f32 1.0, %v590_v32 }
 0x12f   :  { %v594_v38 = vpop.eup %593  ;;  %354 = vst [vmem:[#allocation2 + $0x10] sm:$0xff] %v338_v33  ;;  %v341_v39 = vmul.f32 0.5, %v325_v34  ;;  %v324_v40 = vadd.f32 1.0, %v592_v35 }
 0x130   :  { %v596_v41 = vpop.eup %595  ;;  %362 = vst [vmem:[#allocation2 + $0x50] sm:$0xff] %v346_v36  ;;  %v349_v42 = vmul.f32 0.5, %v333_v37  ;;  %v332_v43 = vadd.f32 1.0, %v594_v38 }
 0x131   :  { %v598_v44 = vpop.eup %597  ;;  %357 = vst [vmem:[#allocation2 + $0x28] sm:$0xff] %v341_v39  ;;  %v340_v45 = vmul.f32 0.5, %v324_v40  ;;  %v327_v46 = vadd.f32 1.0, %v596_v41 }
 0x132   :  { %v600_v47 = vpop.eup %599  ;;  %365 = vst [vmem:[#allocation2 + $0x68] sm:$0xff] %v349_v42  ;;  %v348_v48 = vmul.f32 0.5, %v332_v43  ;;  %v335_v49 = vadd.f32 1.0, %v598_v44 }
 0x133   :  { %v602_v50 = vpop.eup %601  ;;  %356 = vst [vmem:[#allocation2 + $0x20] sm:$0xff] %v340_v45  ;;  %v343_v51 = vmul.f32 0.5, %v327_v46  ;;  %v326_v52 = vadd.f32 1.0, %v600_v47 }
 0x134   :  { %364 = vst [vmem:[#allocation2 + $0x60] sm:$0xff] %v348_v48  ;;  %v351_v53 = vmul.f32 0.5, %v335_v49  ;;  %v334_v54 = vadd.f32 1.0, %v602_v50 }
 0x135   :  { %359 = vst [vmem:[#allocation2 + $0x38] sm:$0xff] %v343_v51  ;;  %v342_v55 = vmul.f32 0.5, %v326_v52 }
 0x136   :  { %367 = vst [vmem:[#allocation2 + $0x78] sm:$0xff] %v351_v53  ;;  %v350_v56 = vmul.f32 0.5, %v334_v54 }
 0x137   :  { %358 = vst [vmem:[#allocation2 + $0x30] sm:$0xff] %v342_v55 }
 0x138   :  { %366 = vst [vmem:[#allocation2 + $0x70] sm:$0xff] %v350_v56 }
 0x139   :  { %372 = vsyncadd [#allocation3], 1920  ;;  %s627_s0 = smov [#allocation2]  }
 0x13a   :  { %s373_s16 = sshll.u32 %s627_s0, 4  ;;  %s374_s16 = int_to_ptr.vmem [resolvable:$true] %s373_s16 }
 0x13b   :  { %s603_s1 = scalar_lea.vmem %s374_s16, 128  ;;  %s607_s17 = scalar_lea.vmem %s374_s16, 2048 }
 0x13c   :  { %p604_p0 = scmp.ne.s32.totalorder %s374_s16, %s603_s1  ;;  %p608_p1 = scmp.lt.s32.totalorder %s374_s16, %s374_s16 }
 0x13d   :  { %p609_p2 = scmp.lt.s32.totalorder %s607_s17, %s603_s1 }
 0x13f   :  { %p610_p3 = por %p609_p2, %p608_p1 }
 0x141   :  { %p611_p4 = pnand %p610_p3, %p604_p0 }
 0x143   :  { %614 = shalt.err (!%p611_p4)
}
 0x144   :  { %s615_s20 = scalar_lea.hbm %s841_s2, 128 }
 0x145   :  { %p616_p5 = scmp.ne.s32.totalorder %s841_s2, %s615_s20  ;;  %p619_p6 = scmp.lt.u32.totalorder %s615_s20, %s841_s2 }
 0x147   :  { %p621_p7 = pnand %p619_p6, %p616_p5 }
 0x149   :  { %624 = shalt.err (!%p621_p7)
}
 0x14a   :  { %s628_s25 = smov 128   ;;  %s629_s26 = smov 8  }
 0x14b   :  { %379 = dma.vmem_to_hbm [thread:$0]  %s374_s16, 128, %s841_s2, [#allocation3], %s628_s25, %s628_s25, %s629_s26  }
 0x14c   :  { %625 = dma.done.wait [#allocation3], 2048  }
 0x14d   :  { %626 = vsyncadd [#allocation3], 4294965248 }
 0x14e   :  { %383 = vsyncpa [#allocation3], 1 }

</bundles_post_ra>
